<compile_context>
chip_gen: v6e
topology: v6e:2x2x1
jax: 0.10.0
libtpu: 0.0.40
codegen_flags: <defaults>
</compile_context>

<pallas_src>
import functools

import jax
import jax.numpy as jnp
from jax.experimental import pallas as pl
from jax.experimental.pallas import tpu as pltpu


# ---------------------------------------------------------------------------
# Kernel
# ---------------------------------------------------------------------------
def _circle_sender_kernel(x_ref, msg_ref, *, c):
    # round(x*c + c) == round((x + 1) / 2 * (vocab_size - 1))
    # jnp.round is round-half-to-even, matching torch.round.
    m = jnp.round(x_ref[...] * c + c).astype(jnp.int32)
    msg_ref[...] = m + 1


# ---------------------------------------------------------------------------
# Tiling policy
# ---------------------------------------------------------------------------
_SUBLANE = 8
_LANE = 128
_FLAT_W = 1024                 # lane width for the padded/flattened fallback
_SMALL_IN_BYTES = 2 << 20      # <= 2 MiB f32 input -> single full-array block
_TILE_IN_BYTES = 2 << 20       # ~2 MiB f32 input per tile -> ~8 MiB double-buffered


def _cost(n_elems):
    # ~3 VALU ops / element; 4 B read + 4 B written per element.
    return pl.CostEstimate(flops=3 * n_elems, transcendentals=0,
                           bytes_accessed=8 * n_elems)


def _pick_row_tile(n_rows, row_bytes):
    """Largest tile height TM (multiple of 8, divisor of n_rows) such that
    TM * row_bytes <= _TILE_IN_BYTES, guaranteeing >= 2 grid steps when
    n_rows allows it and preferring an even step count (v7x megacore)."""
    cap = _TILE_IN_BYTES // row_bytes
    cap = min(cap, n_rows)
    if n_rows >= 2 * _SUBLANE:
        cap = min(cap, n_rows // 2)        # at least 2 grid steps
    cap = (cap // _SUBLANE) * _SUBLANE
    if cap < _SUBLANE:
        return None
    best = None
    for tm in range(cap, _SUBLANE - 1, -_SUBLANE):
        if n_rows % tm == 0:
            if best is None:
                best = tm
            if (n_rows // tm) % 2 == 0:    # balanced megacore split
                return tm
    return best


# ---------------------------------------------------------------------------
# Call paths
# ---------------------------------------------------------------------------
def _call_single_block(kernel, x):
    # Whole array as one block (block_shape == full dims, so no (8,128)
    # alignment needed).  Only taken when the input is <= 2 MiB.
    B, D = x.shape
    spec = pl.BlockSpec((B, D), lambda: (0, 0))
    return pl.pallas_call(
        kernel,
        out_shape=jax.ShapeDtypeStruct((B, D), jnp.int32),
        grid=(),
        in_specs=[spec],
        out_specs=spec,
        cost_estimate=_cost(B * D),
    )(x)


def _call_row_tiled(kernel, x, tm):
    # Full-row (tm, D) tiles, 1-D parallel grid: one large contiguous DMA and
    # a maximally lane-dense output slab per step.
    B, D = x.shape
    spec = pl.BlockSpec((tm, D), lambda i: (i, 0))
    return pl.pallas_call(
        kernel,
        out_shape=jax.ShapeDtypeStruct((B, D), jnp.int32),
        grid=(B // tm,),
        in_specs=[spec],
        out_specs=spec,
        compiler_params=pltpu.CompilerParams(dimension_semantics=("parallel",)),
        cost_estimate=_cost(B * D),
    )(x)


def _call_flat_tiled(kernel, x):
    # Large, fully ragged inputs: pad + reshape to a lane-dense (rows, 1024)
    # view and tile with a 1-D parallel grid.  Keeps every tile small and
    # pipelined instead of loading the whole array into VMEM at once.
    B, D = x.shape
    n = B * D
    rows = -(-n // _FLAT_W)
    rows_pad = -(-rows // _SUBLANE) * _SUBLANE
    n_pad = rows_pad * _FLAT_W
    xf = jnp.pad(x.reshape(-1), (0, n_pad - n)).reshape(rows_pad, _FLAT_W)

    tr = _pick_row_tile(rows_pad, 4 * _FLAT_W) or _SUBLANE
    spec = pl.BlockSpec((tr, _FLAT_W), lambda i: (i, 0))
    mf = pl.pallas_call(
        kernel,
        out_shape=jax.ShapeDtypeStruct((rows_pad, _FLAT_W), jnp.int32),
        grid=(rows_pad // tr,),
        in_specs=[spec],
        out_specs=spec,
        compiler_params=pltpu.CompilerParams(dimension_semantics=("parallel",)),
        cost_estimate=_cost(n_pad),
    )(xf)
    return mf.reshape(-1)[:n].reshape(B, D)


# ---------------------------------------------------------------------------
# Public wrapper (CircleSender.forward)
# ---------------------------------------------------------------------------
def circle_sender_forward(x: jax.Array, vocab_size: int):
    """Pallas implementation of CircleSender.forward.

    Args:
      x: float32 array of shape (B, D), values in [-1, 1].
      vocab_size: static int.

    Returns:
      (message + 1) as int32 of shape (B, D), plus two float32 zero (B, D)
      arrays (produced by the wrapper, not the kernel).
    """
    # TODO(synk): the torch-side runtime asserts (x in [-1,1], msg < vocab)
    # are host-side checks and are intentionally not reproduced in-kernel.
    B, D = x.shape
    c = 0.5 * float(vocab_size - 1)
    kernel = functools.partial(_circle_sender_kernel, c=c)
    in_bytes = 4 * B * D

    if in_bytes <= _SMALL_IN_BYTES:
        msg = _call_single_block(kernel, x)
    else:
        tm = _pick_row_tile(B, 4 * D) if (B % _SUBLANE == 0) else None
        if tm is not None:
            msg = _call_row_tiled(kernel, x, tm)
        else:
            msg = _call_flat_tiled(kernel, x)

    zeros = jnp.zeros((B, D), jnp.float32)
    return msg, zeros, zeros


def _reference(x, vocab_size):
    return jnp.round((x + 1.0) / 2.0 * (vocab_size - 1)).astype(jnp.int32) + 1


# ---------------------------------------------------------------------------
# Self-test
# ---------------------------------------------------------------------------
if __name__ == "__main__":
    vocab_size = 10
    key = jax.random.PRNGKey(0)
    k0, k1, k2 = jax.random.split(key, 3)

    # --- small path (single full-array block) -------------------------------
    B, D = 2, 16
    x_small = jax.random.uniform(k0, (B, D), jnp.float32, -1.0, 1.0)
    msg, z0, z1 = circle_sender_forward(x_small, vocab_size)
    jax.block_until_ready((msg, z0, z1))
    assert msg.shape == (B, D) and msg.dtype == jnp.int32
    assert jnp.array_equal(msg, _reference(x_small, vocab_size))
    assert bool(jnp.all(msg >= 1)) and bool(jnp.all(msg <= vocab_size))
    assert jnp.array_equal(z0, jnp.zeros((B, D), jnp.float32))
    assert jnp.array_equal(z1, jnp.zeros((B, D), jnp.float32))

    # --- row-tiled 1-D grid path (B % 8 == 0, pipelined, megacore) ----------
    x_rows = jax.random.uniform(k1, (1024, 512), jnp.float32, -1.0, 1.0)
    m_rows, _, _ = circle_sender_forward(x_rows, vocab_size)
    jax.block_until_ready(m_rows)
    assert jnp.array_equal(m_rows, _reference(x_rows, vocab_size))

    # --- ragged large input -> padded lane-dense flat path ------------------
    x_rag = jax.random.uniform(k2, (1001, 1000), jnp.float32, -1.0, 1.0)
    m_rag, _, _ = circle_sender_forward(x_rag, vocab_size)
    jax.block_until_ready(m_rag)
    assert jnp.array_equal(m_rag, _reference(x_rag, vocab_size))

    print("KERNEL_OK")
</pallas_src>

<mosaic_0001>
module attributes {stable_mosaic.version = 11 : i64} {
  func.func @_circle_sender_kernel(%arg0: memref<2x16xf32, #tpu.memory_space<vmem>>, %arg1: memref<2x16xi32, #tpu.memory_space<vmem>>) attributes {dimension_semantics = [], scalar_prefetch = 0 : i64, scratch_operands = 0 : i64, tpu.core_type = #tpu.core_type<tc>} {
    %c0 = arith.constant 0 : index
    %c0_0 = arith.constant 0 : index
    %0 = vector.load %arg0[%c0, %c0_0] : memref<2x16xf32, #tpu.memory_space<vmem>>, vector<2x16xf32>
    %cst = arith.constant 4.500000e+00 : f32
    %1 = vector.broadcast %cst : f32 to vector<2x16xf32>
    %2 = arith.mulf %0, %1 : vector<2x16xf32>
    %cst_1 = arith.constant 4.500000e+00 : f32
    %3 = vector.broadcast %cst_1 : f32 to vector<2x16xf32>
    %4 = arith.addf %2, %3 : vector<2x16xf32>
    %5 = math.roundeven %4 : vector<2x16xf32>
    %6 = arith.fptosi %5 : vector<2x16xf32> to vector<2x16xi32>
    %c1_i32 = arith.constant 1 : i32
    %7 = vector.broadcast %c1_i32 : i32 to vector<2x16xi32>
    %8 = arith.addi %6, %7 : vector<2x16xi32>
    %c0_2 = arith.constant 0 : index
    %c0_3 = arith.constant 0 : index
    %9 = vector.load %arg1[%c0_2, %c0_3] : memref<2x16xi32, #tpu.memory_space<vmem>>, vector<2x16xi32>
    tpu.vector_store %arg1[%c0_2, %c0_3], %8 {strides = array<i32>} : memref<2x16xi32, #tpu.memory_space<vmem>>, vector<2x16xi32>,
    return
  }
}

</mosaic_0001>

<bundles_post_ra>
// kernel: tpu_custom_call.1
= control target key start
LH: loop header
LB: loop body
LE: loop exit
PB: predicated region body
PF: predicated region fallthrough
CT: control target
= control target key end

     0   :  { %6 = vsyncpa [#allocation3], 0  ;;  %s110_s0 = inlined_call_operand.hbm [shape: f32[2,16], index: 0, kind: input, shape index: {}]   ;;  %s111_s1 = inlined_call_operand.hbm [shape: s32[2,16], index: 1, kind: output, shape index: {}]  }
   0x1   :  { %7 = vsyncpa [#allocation4], 0  ;;  %s92_s6 = smov [#allocation2]  }
   0x2   :  { %s14_s7 = sshll.u32 %s92_s6, 4  ;;  %s15_s7 = int_to_ptr.vmem [resolvable:$true] %s14_s7 }
   0x3   :  { %s56_s8 = scalar_lea.vmem %s15_s7, 32  ;;  %p61_p1 = scmp.lt.s32.totalorder %s15_s7, %s15_s7 }
   0x4   :  { %p57_p0 = scmp.ne.s32.totalorder %s15_s7, %s56_s8  ;;  %p62_p2 = scmp.lt.s32.totalorder %s56_s8, %s56_s8 }
   0x6   :  { %p63_p3 = por %p62_p2, %p61_p1 }
   0x8   :  { %p64_p4 = pnand %p63_p3, %p57_p0 }
   0xa   :  { %67 = shalt.err (!%p64_p4)
}
   0xb   :  { %17 = dma.hbm_to_vmem [thread:$0]  %s110_s0, 32, %s15_s7, [#allocation3]  }
   0xc   :  { %88 = dma.done.wait [#allocation3], 32  }
   0xd   :  { %89 = vsyncadd [#allocation3], 4294967264  ;;  %v21_v0 = vld [vmem:[#allocation2] sm:$0x3]  ;;  %s93_s11 = smov [#allocation5]   ;;  %vm26_vm0 = vcmask 123904  }
   0xe   :  { %v22_v1 = vmul.f32 4.5, %v21_v0  ;;  %s34_s12 = sshll.u32 %s93_s11, 4  ;;  %s35_s12 = int_to_ptr.vmem [resolvable:$true] %s34_s12 }
   0xf   :  { %s68_s13 = scalar_lea.vmem %s35_s12, 32  ;;  %p73_p6 = scmp.lt.s32.totalorder %s35_s12, %s35_s12 }
  0x10   :  { %v23_v2 = vadd.f32 4.5, %v22_v1  ;;  %p69_p5 = scmp.ne.s32.totalorder %s35_s12, %s68_s13  ;;  %p74_p7 = scmp.lt.s32.totalorder %s68_s13, %s68_s13 }
  0x12   :  { %v45_v3 = vcvt.f32.s32 %v23_v2  ;;  %p75_p8 = por %p74_p7, %p73_p6 }
  0x14   :  { %v25_v4 = vadd.s32 1, %v45_v3  ;;  %p76_p9 = pnand %p75_p8, %p69_p5 }
  0x16   :  { %27 = vst.msk [vmem:[#allocation5] sm:$0x3] %vm26_vm0, %v25_v4 }
  0x17   :  { %79 = shalt.err (!%p76_p9)
}
  0x18   :  { %37 = dma.vmem_to_hbm [thread:$0]  %s35_s12, 32, %s111_s1, [#allocation4]  }
  0x19   :  { %90 = dma.done.wait [#allocation4], 32  }
  0x1a   :  { %91 = vsyncadd [#allocation4], 4294967264 }
  0x1b   :  { %41 = vsyncpa [#allocation3], 1 }
  0x1c   :  { %42 = vsyncpa [#allocation4], 1 }

</bundles_post_ra>
